<compile_context>
chip_gen: v6e
topology: v6e:2x2x1
jax: 0.10.0
libtpu: 0.0.40
codegen_flags: <defaults>
</compile_context>

<pallas_src>
import functools

import jax
import jax.numpy as jnp
from jax import lax
from jax.experimental import pallas as pl
from jax.experimental.pallas import tpu as pltpu

_LANES = 128


# --------------------------------------------------------------------------- #
# Kernels
# --------------------------------------------------------------------------- #
def _softplus(t):
    # stable: log(1 + exp(t)) = max(t, 0) + log1p(exp(-|t|))
    return jnp.maximum(t, 0.0) + jnp.log1p(jnp.exp(-jnp.abs(t)))


def _packed_kernel(d, p, b_ref, x_ref, w_ref, o_ref):
    """p = 128 // d logical rows packed per kernel row (d in {16, 32, 64, 128}).

    b_ref: (1,)        f32 SMEM   -- bias * (-inds)
    x_ref: (TB, 128)   input tile -- p logical rows of width d along lanes
    w_ref: (1, 128)    f32        -- (weight * -inds/dims) tiled p times
    o_ref: (TB, p)     f32 output tile
    """
    x = x_ref[...].astype(jnp.float32)
    w = w_ref[...].astype(jnp.float32)            # broadcast over sublanes
    s = x * w

    # Within-segment (length-d) tree sum along lanes: after shifts 1,2,...,d/2
    # lane (m+1)*d-1 holds the sum of segment m (XLU rolls, VPU adds).
    shift = 1
    while shift < d:
        s = s + pltpu.roll(s, shift, 1)
        shift *= 2

    # Keep only the segment-end lanes, then compact segment m's sum to lane m.
    lane = lax.broadcasted_iota(jnp.int32, (1, _LANES), 1)
    z = jnp.where(lane % d == d - 1, s, 0.0)
    c = jnp.zeros_like(z)
    for j in range(p):
        src = (j + 1) * d - 1                     # lane holding segment j's sum
        c = c + pltpu.roll(z, (j - src) % _LANES, 1)

    t = c[:, :p] + b_ref[0]                       # t == -inds * z_linear
    o_ref[...] = _softplus(t).astype(o_ref.dtype)


def _rowwise_kernel(b_ref, x_ref, w_ref, o_ref):
    """Fallback for D not in {16, 32, 64, 128} (or B not divisible by p).

    b_ref: (1,)     f32 SMEM
    x_ref: (TB, D)  input tile
    w_ref: (1, D)   f32
    o_ref: (TB, 1)  f32
    """
    x = x_ref[...].astype(jnp.float32)
    w = w_ref[...].astype(jnp.float32)
    t = jnp.sum(x * w, axis=-1, keepdims=True) + b_ref[0]
    o_ref[...] = _softplus(t).astype(o_ref.dtype)


# --------------------------------------------------------------------------- #
# Tiling helpers (generation aware)
# --------------------------------------------------------------------------- #
def _round_up(n, m):
    return ((n + m - 1) // m) * m


def _vmem_capacity_bytes():
    try:
        return int(pltpu.get_tpu_info().vmem_capacity_bytes)
    except Exception:
        return 128 << 20        # v5e / v6e physical VMEM


def _per_buffer_budget(cap):
    # ~12 MiB per input buffer on 128 MiB-VMEM chips, scaled down on v7x (64 MiB).
    # Sized in f32-equivalent bytes (conservative for bf16 inputs + f32 upcast).
    return max(2 << 20, min(12 << 20, cap // 5))


def _vmem_limit(cap):
    # 2 double-buffered input tiles + weight + output + headroom, below physical.
    return int(min(cap * 3 // 4, 40 << 20))


def _tile_rows(total_rows, row_width_elems, budget_bytes):
    """Rows per grid step: big enough to amortize ~0.35us/step, multiple of 8,
    and giving >=2 grid steps when there is enough work (v7x dual TensorCore)."""
    if total_rows <= 8:
        return total_rows
    tb = max(budget_bytes // (row_width_elems * 4), 8)
    tb = (tb // 8) * 8
    tb = min(tb, _round_up(total_rows, 8))
    if total_rows >= 16 and pl.cdiv(total_rows, tb) < 2:
        tb = _round_up(pl.cdiv(total_rows, 2), 8)
    return tb


def _user_rows(rows_total, requested):
    if rows_total <= 8:
        return rows_total
    tb = max(8, min(rows_total, requested))
    return (tb // 8) * 8


# --------------------------------------------------------------------------- #
# Forward wrapper
# --------------------------------------------------------------------------- #
def exp_linear_forward(x, weight, bias, inds=1.0, dims_divisor=1.0, block_rows=None):
    """Pallas forward of exp_linear.

    x:      (B, D) float32 or bfloat16
    weight: (1, D)   nn.Linear(dims, 1) weight
    bias:   (1,)     nn.Linear(dims, 1) bias
    inds:   scalar   (default 1.0)
    dims_divisor: self.dims (1, or D when divide_dims=True)
    block_rows: optional logical rows per grid step (testing / tuning)
    returns (B, 1) float32
    """
    B, D = x.shape
    inds_f = jnp.asarray(inds, jnp.float32)
    # Fold divisor and -inds into the O(D) weight/bias -> x passes through untouched.
    w_eff = weight.astype(jnp.float32) * (-inds_f / jnp.asarray(dims_divisor, jnp.float32))
    b_eff = (bias.astype(jnp.float32) * (-inds_f)).reshape(1)

    cap = _vmem_capacity_bytes()
    budget = _per_buffer_budget(cap)
    cparams = pltpu.CompilerParams(
        dimension_semantics=("parallel",),
        vmem_limit_bytes=_vmem_limit(cap),
    )

    packed_ok = (D in (16, 32, 64, 128))
    p = _LANES // D if packed_ok else 1
    packed_ok = packed_ok and (B % p == 0)

    if packed_ok:
        Bp, W = B // p, p * D                      # W == 128
        x_packed = x.reshape(Bp, W)                # contiguous -> no data movement
        w_tiled = jnp.tile(w_eff.reshape(1, D), (1, p))

        if block_rows is not None:
            tbp = _user_rows(Bp, max(1, block_rows // p))
        else:
            tbp = _tile_rows(Bp, W, budget)

        out = pl.pallas_call(
            functools.partial(_packed_kernel, D, p),
            out_shape=jax.ShapeDtypeStruct((Bp, p), jnp.float32),
            grid=(pl.cdiv(Bp, tbp),),
            in_specs=[
                pl.BlockSpec(memory_space=pltpu.SMEM),           # bias scalar
                pl.BlockSpec((tbp, W), lambda i: (i, 0)),         # packed x tile
                pl.BlockSpec((1, W), lambda i: (0, 0)),           # tiled weight
            ],
            out_specs=pl.BlockSpec((tbp, p), lambda i: (i, 0)),
            compiler_params=cparams,
        )(b_eff, x_packed, w_tiled)
        return out.reshape(B, 1)

    # Fallback: row-wise reduction (general D).
    if block_rows is not None:
        tb = _user_rows(B, block_rows)
    else:
        tb = _tile_rows(B, _round_up(D, _LANES), budget)

    out = pl.pallas_call(
        _rowwise_kernel,
        out_shape=jax.ShapeDtypeStruct((B, 1), jnp.float32),
        grid=(pl.cdiv(B, tb),),
        in_specs=[
            pl.BlockSpec(memory_space=pltpu.SMEM),               # bias scalar
            pl.BlockSpec((tb, D), lambda i: (i, 0)),              # x tile
            pl.BlockSpec((1, D), lambda i: (0, 0)),               # weight (resident)
        ],
        out_specs=pl.BlockSpec((tb, 1), lambda i: (i, 0)),
        compiler_params=cparams,
    )(b_eff, x, w_eff.reshape(1, D))
    return out


def init_exp_linear_params(key, dims):
    """Deterministic init mimicking nn.Linear(dims, 1) default (uniform +-1/sqrt(dims))."""
    kw, kb = jax.random.split(key)
    bound = 1.0 / jnp.sqrt(jnp.asarray(dims, jnp.float32))
    weight = jax.random.uniform(kw, (1, dims), jnp.float32, -bound, bound)
    bias = jax.random.uniform(kb, (1,), jnp.float32, -bound, bound)
    return weight, bias


# TODO(synk): exp_linear.predict() (sign / probability post-processing with Python
# list comprehensions) is host-side logic and is intentionally not a kernel.

if __name__ == "__main__":
    key = jax.random.PRNGKey(0)
    k1, k2, k3, k4 = jax.random.split(key, 4)

    def ref(x, weight, bias, inds, dims_divisor):
        xs = x.astype(jnp.float32) / dims_divisor
        z = jnp.sum(xs * weight.astype(jnp.float32), axis=-1, keepdims=True) + bias
        t = -inds * z
        return jnp.maximum(t, 0.0) + jnp.log1p(jnp.exp(-jnp.abs(t)))

    # Case 1: packed path (D=32 -> p=4), defaults, forced multi-step grid.
    B, D = 256, 32
    x = jax.random.normal(k1, (B, D), jnp.float32)
    weight, bias = init_exp_linear_params(k2, D)
    y1 = jax.block_until_ready(
        exp_linear_forward(x, weight, bias, inds=1.0, dims_divisor=1.0, block_rows=64))
    assert y1.shape == (B, 1)
    assert jnp.allclose(y1, ref(x, weight, bias, 1.0, 1.0), atol=1e-5), "mismatch case 1"

    # Case 2: packed path, divide_dims=True, non-default inds, B=100 (partial tail block).
    B2 = 100
    x2 = jax.random.normal(k3, (B2, D), jnp.float32)
    y2 = jax.block_until_ready(
        exp_linear_forward(x2, weight, bias, inds=-1.5, dims_divisor=float(D)))
    assert jnp.allclose(y2, ref(x2, weight, bias, -1.5, float(D)), atol=1e-5), "mismatch case 2"

    # Case 3: fallback row-wise path (D=40 does not divide 128).
    B3, D3 = 64, 40
    x3 = jax.random.normal(k4, (B3, D3), jnp.float32)
    w3, b3 = init_exp_linear_params(k2, D3)
    y3 = jax.block_until_ready(
        exp_linear_forward(x3, w3, b3, inds=2.0, dims_divisor=1.0))
    assert jnp.allclose(y3, ref(x3, w3, b3, 2.0, 1.0), atol=1e-5), "mismatch case 3"

    # Case 4: packed path with bfloat16 input (D=64 -> p=2), half the HBM bytes.
    B4, D4 = 128, 64
    x4 = jax.random.normal(k1, (B4, D4), jnp.float32).astype(jnp.bfloat16)
    w4, b4 = init_exp_linear_params(k3, D4)
    y4 = jax.block_until_ready(
        exp_linear_forward(x4, w4, b4, inds=1.0, dims_divisor=float(D4)))
    assert jnp.allclose(y4, ref(x4, w4, b4, 1.0, float(D4)), atol=1e-5), "mismatch case 4"

    print("KERNEL_OK")
</pallas_src>

<mosaic_0001>
module attributes {stable_mosaic.version = 11 : i64} {
  func.func @_packed_kernel(%arg0: i32, %arg1: memref<1xf32, #tpu.memory_space<smem>>, %arg2: memref<16x128xf32, #tpu.memory_space<vmem>>, %arg3: memref<1x128xf32, #tpu.memory_space<vmem>>, %arg4: memref<16x4xf32, #tpu.memory_space<vmem>>) attributes {dimension_semantics = [#tpu.dimension_semantics<parallel>], iteration_bounds = array<i64: 4>, scalar_prefetch = 0 : i64, scratch_operands = 0 : i64, tpu.core_type = #tpu.core_type<tc>, window_params = [{transform_indices = @transform_0, window_bounds = array<i64: 1>}, {transform_indices = @transform_1, window_bounds = array<i64: 16, 128>}, {pipeline_mode = #tpu.pipeline_mode<synchronous>, transform_indices = @transform_2, window_bounds = array<i64: 1, 128>}, {transform_indices = @transform_3, window_bounds = array<i64: 16, 4>}]} {
    %c0 = arith.constant 0 : index
    %c0_0 = arith.constant 0 : index
    %0 = vector.load %arg2[%c0, %c0_0] : memref<16x128xf32, #tpu.memory_space<vmem>>, vector<16x128xf32>
    %c0_1 = arith.constant 0 : index
    %c0_2 = arith.constant 0 : index
    %1 = vector.load %arg3[%c0_1, %c0_2] : memref<1x128xf32, #tpu.memory_space<vmem>>, vector<1x128xf32>
    %2 = vector.broadcast %1 : vector<1x128xf32> to vector<16x128xf32>
    %3 = arith.mulf %0, %2 : vector<16x128xf32>
    %c1_i32 = arith.constant 1 : i32
    %4 = tpu.dynamic_rotate %3 by %c1_i32 dim 1 : vector<16x128xf32>, i32 -> vector<16x128xf32>
    %5 = arith.addf %3, %4 : vector<16x128xf32>
    %c2_i32 = arith.constant 2 : i32
    %6 = tpu.dynamic_rotate %5 by %c2_i32 dim 1 : vector<16x128xf32>, i32 -> vector<16x128xf32>
    %7 = arith.addf %5, %6 : vector<16x128xf32>
    %c4_i32 = arith.constant 4 : i32
    %8 = tpu.dynamic_rotate %7 by %c4_i32 dim 1 : vector<16x128xf32>, i32 -> vector<16x128xf32>
    %9 = arith.addf %7, %8 : vector<16x128xf32>
    %c8_i32 = arith.constant 8 : i32
    %10 = tpu.dynamic_rotate %9 by %c8_i32 dim 1 : vector<16x128xf32>, i32 -> vector<16x128xf32>
    %11 = arith.addf %9, %10 : vector<16x128xf32>
    %c16_i32 = arith.constant 16 : i32
    %12 = tpu.dynamic_rotate %11 by %c16_i32 dim 1 : vector<16x128xf32>, i32 -> vector<16x128xf32>
    %13 = arith.addf %11, %12 : vector<16x128xf32>
    %14 = tpu.iota {dimensions = array<i32: 1>} : vector<1x128xi32>
    %c32_i32 = arith.constant 32 : i32
    %c0_i32 = arith.constant 0 : i32
    %15 = arith.cmpi eq, %c32_i32, %c0_i32 : i32
    %c1_i32_3 = arith.constant 1 : i32
    %16 = arith.select %15, %c1_i32_3, %c32_i32 : i32
    %17 = vector.broadcast %16 : i32 to vector<1x128xi32>
    %18 = arith.remsi %14, %17 : vector<1x128xi32>
    %c0_i32_4 = arith.constant 0 : i32
    %19 = vector.broadcast %c0_i32_4 : i32 to vector<1x128xi32>
    %20 = arith.cmpi ne, %18, %19 : vector<1x128xi32>
    %c0_i32_5 = arith.constant 0 : i32
    %21 = vector.broadcast %c0_i32_5 : i32 to vector<1x128xi32>
    %22 = arith.cmpi slt, %18, %21 : vector<1x128xi32>
    %c0_i32_6 = arith.constant 0 : i32
    %23 = arith.cmpi slt, %16, %c0_i32_6 : i32
    %24 = vector.broadcast %23 : i1 to vector<1x128xi1>
    %25 = vector.broadcast %24 : vector<1x128xi1> to vector<1x128xi1>
    %26 = arith.xori %22, %25 : vector<1x128xi1>
    %27 = arith.andi %26, %20 : vector<1x128xi1>
    %28 = vector.broadcast %16 : i32 to vector<1x128xi32>
    %29 = arith.addi %18, %28 : vector<1x128xi32>
    %30 = arith.select %27, %29, %18 : vector<1x128xi1>, vector<1x128xi32>
    %c31_i32 = arith.constant 31 : i32
    %31 = vector.broadcast %c31_i32 : i32 to vector<1x128xi32>
    %32 = arith.cmpi eq, %30, %31 : vector<1x128xi32>
    %cst = arith.constant 0.000000e+00 : f32
    %33 = vector.shape_cast %32 : vector<1x128xi1> to vector<1x128xi1>
    %34 = vector.broadcast %33 : vector<1x128xi1> to vector<16x128xi1>
    %35 = vector.broadcast %cst : f32 to vector<16x128xf32>
    %36 = arith.select %34, %13, %35 : vector<16x128xi1>, vector<16x128xf32>
    %cst_7 = arith.constant 0.000000e+00 : f32
    %37 = vector.broadcast %cst_7 : f32 to vector<16x128xf32>
    %c97_i32 = arith.constant 97 : i32
    %38 = tpu.dynamic_rotate %36 by %c97_i32 dim 1 : vector<16x128xf32>, i32 -> vector<16x128xf32>
    %39 = arith.addf %37, %38 : vector<16x128xf32>
    %c66_i32 = arith.constant 66 : i32
    %40 = tpu.dynamic_rotate %36 by %c66_i32 dim 1 : vector<16x128xf32>, i32 -> vector<16x128xf32>
    %41 = arith.addf %39, %40 : vector<16x128xf32>
    %c35_i32 = arith.constant 35 : i32
    %42 = tpu.dynamic_rotate %36 by %c35_i32 dim 1 : vector<16x128xf32>, i32 -> vector<16x128xf32>
    %43 = arith.addf %41, %42 : vector<16x128xf32>
    %c4_i32_8 = arith.constant 4 : i32
    %44 = tpu.dynamic_rotate %36 by %c4_i32_8 dim 1 : vector<16x128xf32>, i32 -> vector<16x128xf32>
    %45 = arith.addf %43, %44 : vector<16x128xf32>
    %46 = vector.extract_strided_slice %45 {offsets = [0, 0], sizes = [16, 4], strides = [1, 1]} : vector<16x128xf32> to vector<16x4xf32>
    %c0_9 = arith.constant 0 : index
    %47 = memref.load %arg1[%c0_9] : memref<1xf32, #tpu.memory_space<smem>>
    %48 = vector.broadcast %47 : f32 to vector<16x4xf32>
    %49 = arith.addf %46, %48 : vector<16x4xf32>
    %cst_10 = arith.constant 0.000000e+00 : f32
    %50 = vector.broadcast %cst_10 : f32 to vector<16x4xf32>
    %51 = arith.maximumf %49, %50 : vector<16x4xf32>
    %52 = math.absf %49 : vector<16x4xf32>
    %cst_11 = arith.constant 0.000000e+00 : f32
    %53 = vector.broadcast %cst_11 : f32 to vector<16x4xf32>
    %54 = arith.subf %53, %52 : vector<16x4xf32>
    %55 = math.exp %54 : vector<16x4xf32>
    %56 = math.log1p %55 : vector<16x4xf32>
    %57 = arith.addf %51, %56 : vector<16x4xf32>
    %c0_12 = arith.constant 0 : index
    %c0_13 = arith.constant 0 : index
    %58 = vector.load %arg4[%c0_12, %c0_13] : memref<16x4xf32, #tpu.memory_space<vmem>>, vector<16x4xf32>
    tpu.vector_store %arg4[%c0_12, %c0_13], %57 {strides = array<i32>} : memref<16x4xf32, #tpu.memory_space<vmem>>, vector<16x4xf32>,
    return
  }
  func.func @transform_0(%arg0: i32) -> i32 {
    %c0_i32 = arith.constant 0 : i32
    %c0_i32_0 = arith.constant 0 : i32
    return %c0_i32 : i32
  }
  func.func @transform_1(%arg0: i32) -> (i32, i32) {
    %c0_i32 = arith.constant 0 : i32
    %c0_i32_0 = arith.constant 0 : i32
    return %arg0, %c0_i32 : i32, i32
  }
  func.func @transform_2(%arg0: i32) -> (i32, i32) {
    %c0_i32 = arith.constant 0 : i32
    %c0_i32_0 = arith.constant 0 : i32
    %c0_i32_1 = arith.constant 0 : i32
    return %c0_i32, %c0_i32_0 : i32, i32
  }
  func.func @transform_3(%arg0: i32) -> (i32, i32) {
    %c0_i32 = arith.constant 0 : i32
    %c0_i32_0 = arith.constant 0 : i32
    return %arg0, %c0_i32 : i32, i32
  }
}

</mosaic_0001>

<bundles_post_ra>
// kernel: tpu_custom_call.1
= control target key start
LH: loop header
LB: loop body
LE: loop exit
PB: predicated region body
PF: predicated region fallthrough
CT: control target
= control target key end

     0   :  { %s659_s0 = inlined_call_operand.<no memory space> [shape: f32[1], index: 0, kind: input, shape index: {}]   ;;  %s660_s1 = inlined_call_operand.hbm [shape: f32[64,128], index: 1, kind: input, shape index: {}]   ;;  %s661_s2 = inlined_call_operand.vmem [shape: f32[1,128], index: 2, kind: input, shape index: {}]   ;;  %s662_s3 = inlined_call_operand.vmem [shape: f32[64,4], index: 3, kind: output, shape index: {}]  }
   0x1   :  { %8 = sst [smem:[#allocation2]] %s659_s0 }
   0x2   :  { %9 = vsyncpa [#allocation4], 0 }
   0x3   :  { %11 = vsyncpa [#allocation4 + $0x1], 0  ;;  %s552_s14 = smov 0   ;;  %s554_s15 = smov 0  }
   0x4   :  { %s556_s16 = smov 0   ;;  %s558_s17 = smov 0  }
   0x5 LB: > { %s382_s0 = sadd.s32 4294967295, %s516_s17   ;;  %s572_s18 = sadd.s32 1, %s516_s17   ;;  %s516_s17 = sphi %s558_s17, %s671_s17   ;;  %s512_s16 = sphi %s556_s16, %s670_s16   ;;  %s508_s15 = sphi %s554_s15, %s669_s15   ;;  %s504_s14 = sphi %s552_s14, %s668_s14  }
   0x6   : > { %s42_s19 = ssub.s32 %s516_s17, %s572_s18  ;;  %s45_s20 = sadd.s32 1, %s512_s16 }
   0x7   : > { %p43_p0 = scmp.eq.s32.totalorder %s42_s19, 0  ;;  %p52_p1 = scmp.ne.s32.totalorder %s512_s16, %s508_s15 }
   0x8   : > { %p53_p2 = scmp.eq.s32.totalorder %s516_s17, 0  ;;  %p58_p3 = scmp.ne.s32.totalorder %s508_s15, %s504_s14 }
   0x9   : > { %s582_s21 = scalar_select %p43_p0, %s512_s16, %s45_s20  }
   0xa   : > { %p54_p4 = por %p53_p2, %p52_p1  ;;  %p59_p5 = scmp.eq.s32.totalorder %s382_s0, 0 }
   0xb   : > { %p403_p6 = scmp.lt.s32.totalorder %s516_s17, 4  ;;  %s135_s23 = sand.u32 1, %s512_s16  }
   0xc   : > { %p587_p7 = por %p59_p5, %p58_p3  ;;  %s386_s24 = sshll.u32 %s135_s23, 4 }
   0xd   : > { %s396_s25 = sshll.u32 %s516_s17, 8  ;;  %s139_s29 = scalar_lea.vmem [#allocation3], %s386_s24 }
   0xe   : > { %s664_s22 = scalar_select %p587_p7, 1, 0 }
   0xf   : > { %s596_s28 = scalar_lea.hbm %s660_s1, %s396_s25  ;;  %s146_s30 = sshll.u32 %s139_s29, 4  ;;  %s598_s30 = int_to_ptr.vmem [resolvable:$true] %s146_s30 }
  0x10   : > { %p600_p8 = pnand %p403_p6, %p54_p4  ;;  %s605_s5 = scalar_lea.sflag [#allocation4], %s135_s23 }
  0x11   : > { %s454_s6 = scalar_lea.hbm %s596_s28, 256  ;;  %s459_s9 = scalar_lea.hbm %s660_s1, 1024 }
  0x12   : > { %p455_p10 = scmp.ne.s32.totalorder %s596_s28, %s454_s6  ;;  %p456_p11 = pneg %p600_p8 }
  0x13   : > { %p460_p0 = scmp.lt.s32.totalorder %s596_s28, %s660_s1  ;;  %p461_p1 = scmp.lt.s32.totalorder %s459_s9, %s454_s6 }
  0x14   : > { %p457_p12 = pnand %p456_p11, %p455_p10 }
  0x15   : > { %p462_p2 = por %p461_p1, %p460_p0 }
  0x16   : > { %p458_p13 = pneg %p457_p12 }
  0x18   : > { %p463_p3 = pnand %p462_p2, %p458_p13 }
  0x1a   : > { %466 = shalt.err (!%p463_p3)
}
  0x1b   : > { %s467_s12 = scalar_lea.vmem %s598_s30, 256  ;;  %s518_s13 = smov [#allocation3]  }
  0x1c   : > { %p468_p4 = scmp.ne.s32.totalorder %s598_s30, %s467_s12  ;;  %s472_s14 = sshll.u32 %s518_s13, 4  ;;  %s473_s14 = int_to_ptr.vmem [resolvable:$false] %s472_s14 }
  0x1d   : > { %s474_s19 = scalar_lea.vmem %s473_s14, 512  ;;  %p475_p10 = scmp.lt.s32.totalorder %s598_s30, %s473_s14 }
  0x1e   : > { %p470_p5 = pnand %p468_p4, %p456_p11  ;;  %p476_p12 = scmp.lt.s32.totalorder %s474_s19, %s467_s12 }
  0x20   : > { %p471_p6 = pneg %p470_p5  ;;  %p477_p9 = por %p476_p12, %p475_p10 }
  0x22   : > { %p478_p7 = pnand %p477_p9, %p471_p6 }
  0x24   : > { %481 = shalt.err (!%p478_p7)
}
  0x25   : > { %s519_s20 = smov 128   ;;  %s520_s23 = smov 8  }
  0x26   : > { %402 = dma.hbm_to_vmem [thread:$0]  (!%p600_p8), %s596_s28, 256, %s598_s30, %s605_s5, %s519_s20, %s519_s20, %s520_s23  }
  0x27   : > { %p154_p11 = scmp.lt.s32.totalorder %s516_s17, 5  ;;  %p666_p13 = scmp.ge.s32.totalorder %s516_s17, 1 }
  0x29   : > { %p155_p0 = pnand %p666_p13, %p154_p11 }
  0x2a   : > { %s160_s24 = sand.u32 (!%p155_p0), 1, %s508_s15   ;;  %p667_p7 = scmp.ne.s32.totalorder (!%p155_p0), %s664_s22, 0 }
  0x2b   : > { %158 = sbr.rel (%p155_p0) target bundleno = 813 (0x32d), region = 32  ;;  %s390_s25 = sshll.u32 (!%p155_p0), %s160_s24, 4 }
  0x2c   : > { %s161_s26 = scalar_lea.sflag (!%p155_p0), [#allocation4], %s160_s24  ;;  %s164_s27 = scalar_lea.vmem (!%p155_p0), [#allocation3], %s390_s25 }
  0x30   : > { %499 = dma.done.wait (%p667_p7), %s161_s26, 256  }
  0x31   : > { %501 = vsyncadd (%p667_p7), %s161_s26, 4294967040  ;;  %v194_v0 = vld [vmem:[%s164_s27] sm:$0xff]  ;;  %v195_v1 = vld [vmem:[%s164_s27 + $0x8] sm:$0xff]  ;;  %s521_s28 = smov 1   ;;  %s522_s30 = smov 2   ;;  %v235_v21 = vlaneseq  ;;  %vm312_vm3 = vcmask 31744  }
  0x32   : > { %v393_v2 = vld [vmem:[%s661_s2] ss:$0 sm:$0xff]  ;;  %s523_s22 = smov 4   ;;  %s524_s5 = smov 8  }
  0x33   : > { %v203_v3 = vmul.f32 %v393_v2, %v194_v0  ;;  %v204_v4 = vmul.f32 %v393_v2, %v195_v1  ;;  %s525_s6 = smov 16   ;;  %v236_v22 = vand.u32 127, %v235_v21  ;;  %s526_s7 = smov 66  }
  0x34   : > { %s527_s8 = smov 97   ;;  %s528_s9 = smov 35  }
  0x35   : > { %205 = vrot.lane.b32.xlu0 %v203_v3, %s521_s28  ;;  %v241_v23 = vand.u32 31, %v236_v22  ;;  %s278_s10 = sld [smem:[#allocation2]]  ;;  %s391_s11 = sshll.u32 %s382_s0, 1 }
  0x36   : > { %p189_p8 = scmp.lt.s32.totalorder %s391_s11, 7 }
  0x37   : > { %vm249_vm0 = vcmp.eq.s32.totalorder %v241_v23, 31 }
  0x38   : > { %s673_s11 = smov (!%p189_p8, %s391_s11), 7 }
  0x39   : > { %207 = vrot.lane.b32.xlu0 %v204_v4, %s521_s28  ;;  %s392_s12 = sshll.u32 %s673_s11, 3 }
  0x3a   : > { %s192_s13 = scalar_lea.vmem %s662_s3, %s392_s12 }
  0x3b   : > { %v279_v40 = vstv %s278_s10 }
  0xa7   : > { %v206_v5 = vpop.permute.xlu0 %205 }
  0xa8   : > { %v209_v6 = vadd.f32 %v206_v5, %v203_v3 }
  0xaa   : > { %211 = vrot.lane.b32.xlu1 %v209_v6, %s522_s30 }
  0xab   : > { %v208_v7 = vpop.permute.xlu0 %207 }
  0xac   : > { %v210_v8 = vadd.f32 %v208_v7, %v204_v4 }
  0xae   : > { %213 = vrot.lane.b32.xlu1 %v210_v8, %s522_s30 }
 0x11c   : > { %v212_v9 = vpop.permute.xlu1 %211 }
 0x11d   : > { %v215_v10 = vadd.f32 %v212_v9, %v209_v6 }
 0x11f   : > { %217 = vrot.lane.b32.xlu0 %v215_v10, %s523_s22 }
 0x120   : > { %v214_v11 = vpop.permute.xlu1 %213 }
 0x121   : > { %v216_v12 = vadd.f32 %v214_v11, %v210_v8 }
 0x123   : > { %219 = vrot.lane.b32.xlu1 %v216_v12, %s523_s22 }
 0x191   : > { %v218_v13 = vpop.permute.xlu0 %217 }
 0x192   : > { %v221_v14 = vadd.f32 %v218_v13, %v215_v10 }
 0x194   : > { %223 = vrot.lane.b32.xlu0 %v221_v14, %s524_s5 }
 0x195   : > { %v220_v15 = vpop.permute.xlu1 %219 }
 0x196   : > { %v222_v16 = vadd.f32 %v220_v15, %v216_v12 }
 0x198   : > { %225 = vrot.lane.b32.xlu1 %v222_v16, %s524_s5 }
 0x206   : > { %v224_v17 = vpop.permute.xlu0 %223 }
 0x207   : > { %v227_v18 = vadd.f32 %v224_v17, %v221_v14 }
 0x209   : > { %229 = vrot.lane.b32.xlu0 %v227_v18, %s525_s6 }
 0x20a   : > { %v226_v19 = vpop.permute.xlu1 %225 }
 0x20b   : > { %v228_v20 = vadd.f32 %v226_v19, %v222_v16 }
 0x20d   : > { %231 = vrot.lane.b32.xlu1 %v228_v20, %s525_s6 }
 0x27b   : > { %v230_v24 = vpop.permute.xlu0 %229 }
 0x27c   : > { %v233_v25 = vadd.f32 %v230_v24, %v227_v18 }
 0x27e   : > { %v252_v26 = vsel %vm249_vm0, %v233_v25, 0.0 }
 0x27f   : > { %v232_v27 = vpop.permute.xlu1 %231  ;;  %260 = vrot.lane.b32.xlu1 %v252_v26, %s526_s7  ;;  %254 = vrot.lane.b32.xlu0 %v252_v26, %s527_s8 }
 0x280   : > { %v234_v28 = vadd.f32 %v232_v27, %v228_v20 }
 0x282   : > { %v253_v29 = vsel %vm249_vm0, %v234_v28, 0.0 }
 0x283   : > { %262 = vrot.lane.b32.xlu1 %v253_v29, %s526_s7  ;;  %256 = vrot.lane.b32.xlu0 %v253_v29, %s527_s8 }
 0x287   : > { %268 = vrot.lane.b32.xlu1 %v253_v29, %s528_s9  ;;  %266 = vrot.lane.b32.xlu0 %v252_v26, %s528_s9 }
 0x28b   : > { %274 = vrot.lane.b32.xlu1 %v253_v29, %s523_s22  ;;  %272 = vrot.lane.b32.xlu0 %v252_v26, %s523_s22 }
 0x2f1   : > { %v261_v30 = vpop.permute.xlu1 %260  ;;  %v255_v31 = vpop.permute.xlu0 %254 }
 0x2f2   : > { %v264_v36 = vadd.f32 %v261_v30, %v255_v31 }
 0x2f5   : > { %v263_v32 = vpop.permute.xlu1 %262  ;;  %v257_v33 = vpop.permute.xlu0 %256 }
 0x2f6   : > { %v265_v37 = vadd.f32 %v263_v32, %v257_v33 }
 0x2f9   : > { %v269_v34 = vpop.permute.xlu1 %268  ;;  %v267_v35 = vpop.permute.xlu0 %266 }
 0x2fa   : > { %v271_v38 = vadd.f32 %v269_v34, %v265_v37  ;;  %v270_v39 = vadd.f32 %v267_v35, %v264_v36 }
 0x2fd   : > { %v275_v41 = vpop.permute.xlu1 %274  ;;  %v273_v42 = vpop.permute.xlu0 %272 }
 0x2fe   : > { %v277_v43 = vadd.f32 %v275_v41, %v271_v38  ;;  %v276_v44 = vadd.f32 %v273_v42, %v270_v39 }
 0x300   : > { %v281_v45 = vadd.f32 %v279_v40, %v277_v43  ;;  %v280_v46 = vadd.f32 %v279_v40, %v276_v44 }
 0x302   : > { %v285_v47 = vand.u32 2147483647, %v281_v45  ;;  %v284_v48 = vand.u32 2147483647, %v280_v46  ;;  %v283_v3 = vmax.f32 %v281_v45, 0.0  ;;  %v282_v7 = vmax.f32 %v280_v46, 0.0 }
 0x304   : > { %v287_v49 = vsub.f32 0.0, %v285_v47  ;;  %v286_v50 = vsub.f32 0.0, %v284_v48 }
 0x306   : > { %v290_v51 = vmul.f32 1.442695, %v287_v49  ;;  %v288_v52 = vmul.f32 1.442695, %v286_v50 }
 0x308   : > { %446 = vpow2.f32 %v290_v51 }
 0x309   : > { %448 = vpow2.f32 %v288_v52 }
 0x315   : > { %v447_v53 = vpop.eup %446 }
 0x316   : > { %v449_v54 = vpop.eup %448  ;;  %v301_v55 = vadd.f32 1.0, %v447_v53  ;;  %v304_v57 = vmul.f32 -0.5, %v447_v53  ;;  %v307_v60 = vand.u32 2147483647, %v447_v53 }
 0x317   : > { %v292_v56 = vadd.f32 1.0, %v449_v54  ;;  %v295_v58 = vmul.f32 -0.5, %v449_v54  ;;  %v298_v62 = vand.u32 2147483647, %v449_v54 }
 0x318   : > { %450 = vlog2.f32 %v301_v55  ;;  %v305_v59 = vadd.f32 1.0, %v304_v57  ;;  %vm308_vm1 = vcmp.lt.f32.partialorder %v307_v60, 0.0004427343 }
 0x319   : > { %452 = vlog2.f32 %v292_v56  ;;  %v296_v61 = vadd.f32 1.0, %v295_v58  ;;  %vm299_vm2 = vcmp.lt.f32.partialorder %v298_v62, 0.0004427343 }
 0x31a   : > { %v306_v2 = vmul.f32 %v447_v53, %v305_v59 }
 0x31b   : > { %v297_v5 = vmul.f32 %v449_v54, %v296_v61 }
 0x325   : > { %v451_v63 = vpop.eup %450 }
 0x326   : > { %v453_v0 = vpop.eup %452  ;;  %v303_v1 = vmul.f32 0.6931472, %v451_v63 }
 0x327   : > { %v294_v4 = vmul.f32 0.6931472, %v453_v0 }
 0x328   : > { %v309_v6 = vsel %vm308_vm1, %v306_v2, %v303_v1 }
 0x329   : > { %v311_v8 = vadd.f32 %v309_v6, %v283_v3  ;;  %v300_v9 = vsel %vm299_vm2, %v297_v5, %v294_v4 }
 0x32a   : > { %v310_v10 = vadd.f32 %v300_v9, %v282_v7 }
 0x32b   : > { %314 = vst.msk [vmem:[%s192_s13 + $0x8] sm:$0xff] %vm312_vm3, %v311_v8 }
 0x32c   : > { %313 = vst.msk [vmem:[%s192_s13] sm:$0xff] %vm312_vm3, %v310_v10 }
 0x32d PF: > { %p14_p9 = scmp.ge.s32.totalorder %s572_s18, 6   ;;  %s668_s14 = smov %s508_s15 }
 0x32e   : > { %s669_s15 = smov %s512_s16  ;;  %s670_s16 = smov %s582_s21 }
 0x32f   : > { %s671_s17 = smov %s572_s18  ;;  %16 = sbr.rel (!%p14_p9) target bundleno = 5 (0x5), region = 72 }
 0x334   :  { %337 = vsyncpa [#allocation4], 1 }
 0x335   :  { %339 = vsyncpa [#allocation4 + $0x1], 1 }

</bundles_post_ra>
